<compile_context>
chip_gen: v5e
topology: v5e:2x2
jax: 0.10.0
libtpu: 0.0.40
codegen_flags: <defaults>
</compile_context>

<pallas_src>
import functools

import jax
import jax.numpy as jnp
from jax.experimental import pallas as pl
from jax.experimental.pallas import tpu as pltpu


_SMEM = pl.BlockSpec(memory_space=pltpu.MemorySpace.SMEM)


# ----------------------------------------------------------------------------
# VMEM budget / lane-tile derivation.
# ----------------------------------------------------------------------------
def _vmem_budget_bytes():
    """~75% of physical VMEM: 96 MiB on v5e/v6e (128 MiB), 48 MiB on v7x (64 MiB)."""
    cap = 64 * 1024 * 1024                      # conservative fallback (v7x-sized)
    try:
        cap = int(pltpu.get_tpu_info().vmem_capacity_bytes)
    except Exception:
        pass
    return (cap * 3) // 4


def _choose_lane_tile(hw, f32_rows_per_lane, vmem_budget_bytes):
    """Largest lane tile whose double-buffered f32 blocks fit the VMEM budget.

    Returns either the full lane extent `hw` (legal block for any hw) or a
    multiple of 128 (< hw); callers use grid=pl.cdiv(hw, tile) and let Pallas
    handle the partial last block, so there is no whole-array fallback and no
    collapse to 128-wide tiles for awkward sizes.
    """
    budget_tile = vmem_budget_bytes // (2 * f32_rows_per_lane * 4)   # 2 bufs, f32
    if budget_tile >= hw:
        return hw
    return max(128, (budget_tile // 128) * 128)


def _resolve_lane_tile(hw, f32_rows_per_lane, vmem_budget_bytes, override):
    if override is not None:                    # test-only override
        return hw if override >= hw else max(128, (override // 128) * 128)
    return _choose_lane_tile(hw, f32_rows_per_lane, vmem_budget_bytes)


def _resident_spec(shape):
    """Whole-array VMEM block whose index never changes -> fetched once."""
    ndim = len(shape)
    return pl.BlockSpec(shape, lambda *_: (0,) * ndim)


# ----------------------------------------------------------------------------
# Kernel 1 (cold, once per param set): prompt_embed = prompt_head(enc(prompts))
# GAP tiled over H*W with a (P, C) accumulator; finalize on the last step.
# ----------------------------------------------------------------------------
def _prompt_embed_kernel(pr_ref, wenc_ref, benc_ref, wp_ref, bp_ref,
                         pe_ref, acc_ref, *, hw, tile):
    j = pl.program_id(0)

    @pl.when(j == 0)
    def _():
        acc_ref[...] = jnp.zeros_like(acc_ref)

    v = pr_ref[...]                                   # (P, C, tile)
    if hw % tile != 0:                                # mask the partial last block
        lane = jax.lax.broadcasted_iota(jnp.int32, v.shape, dimension=2)
        v = jnp.where(j * tile + lane < hw, v, 0.0)
    acc_ref[...] += jnp.sum(v, axis=-1)               # (P, C)

    @pl.when(j == pl.num_programs(0) - 1)
    def _():
        gap = acc_ref[...] * (1.0 / hw)
        # Tiny head matmuls: intentionally left as-is (not worth MXU tiles).
        feats = jnp.dot(gap, wenc_ref[...],
                        preferred_element_type=jnp.float32) + benc_ref[...]
        pe_ref[...] = jnp.dot(feats, wp_ref[...],
                              preferred_element_type=jnp.float32) + bp_ref[...]


def prompt_embeddings(prompts_pchw, w_enc, b_enc, w_prompt, b_prompt, *,
                      lane_tile=None):
    p, c, h, w = prompts_pchw.shape
    d = w_prompt.shape[1]
    hw = h * w
    budget = _vmem_budget_bytes()
    tile = _resolve_lane_tile(hw, p * c, budget, lane_tile)
    n_tiles = pl.cdiv(hw, tile)
    pr3 = prompts_pchw.reshape(p, c, hw)

    kernel = functools.partial(_prompt_embed_kernel, hw=hw, tile=tile)
    return pl.pallas_call(
        kernel,
        out_shape=jax.ShapeDtypeStruct((p, d), jnp.float32),
        grid=(n_tiles,),
        in_specs=[
            pl.BlockSpec((p, c, tile), lambda j: (0, 0, j)),
            _resident_spec(w_enc.shape),
            _resident_spec(b_enc.shape),
            _resident_spec(w_prompt.shape),
            _resident_spec(b_prompt.shape),
        ],
        out_specs=_resident_spec((p, d)),
        scratch_shapes=[pltpu.VMEM((p, c), jnp.float32)],
        compiler_params=pltpu.CompilerParams(
            dimension_semantics=("arbitrary",),      # reduction over lane tiles
            vmem_limit_bytes=budget,
        ),
    )(pr3, w_enc, b_enc, w_prompt, b_prompt)


# ----------------------------------------------------------------------------
# Kernel 2 (per forward): fused GAP(x) -> encoder -> inputs_head -> attn matmul
# (+ optional softmax over prompts, optional tanh).  GAP tiled over H*W.
# ----------------------------------------------------------------------------
def _attention_kernel(x_ref, wenc_ref, benc_ref, wi_ref, bi_ref, pe_ref,
                      attn_ref, acc_ref, *, hw, tile, use_softmax, use_tanh):
    j = pl.program_id(0)

    @pl.when(j == 0)
    def _():
        acc_ref[...] = jnp.zeros_like(acc_ref)

    v = x_ref[...]                                    # (B, C, tile)
    if hw % tile != 0:                                # mask the partial last block
        lane = jax.lax.broadcasted_iota(jnp.int32, v.shape, dimension=2)
        v = jnp.where(j * tile + lane < hw, v, 0.0)
    acc_ref[...] += jnp.sum(v, axis=-1)               # (B, C)

    @pl.when(j == pl.num_programs(0) - 1)
    def _():
        gap = acc_ref[...] * (1.0 / hw)
        feats = jnp.dot(gap, wenc_ref[...],
                        preferred_element_type=jnp.float32) + benc_ref[...]
        inputs_embed = jnp.dot(feats, wi_ref[...],
                               preferred_element_type=jnp.float32) + bi_ref[...]
        attn = jnp.dot(inputs_embed, pe_ref[...].T,
                       preferred_element_type=jnp.float32)    # (B, P)
        # NOTE: softmax then tanh — same ordering as the PyTorch module.
        if use_softmax:
            attn = jax.nn.softmax(attn, axis=1)
        if use_tanh:
            attn = jnp.tanh(attn)
        attn_ref[...] = attn


def attention_weights(x_bchw, prompt_embed, w_enc, b_enc, w_inputs, b_inputs, *,
                      use_softmax, use_tanh, lane_tile=None):
    b, c, h, w = x_bchw.shape
    p = prompt_embed.shape[0]
    hw = h * w
    budget = _vmem_budget_bytes()
    tile = _resolve_lane_tile(hw, b * c, budget, lane_tile)
    n_tiles = pl.cdiv(hw, tile)
    x3 = x_bchw.reshape(b, c, hw)

    kernel = functools.partial(_attention_kernel, hw=hw, tile=tile,
                               use_softmax=use_softmax, use_tanh=use_tanh)
    return pl.pallas_call(
        kernel,
        out_shape=jax.ShapeDtypeStruct((b, p), jnp.float32),
        grid=(n_tiles,),
        in_specs=[
            pl.BlockSpec((b, c, tile), lambda j: (0, 0, j)),
            _resident_spec(w_enc.shape),
            _resident_spec(b_enc.shape),
            _resident_spec(w_inputs.shape),
            _resident_spec(b_inputs.shape),
            _resident_spec(prompt_embed.shape),
        ],
        out_specs=_resident_spec((b, p)),
        scratch_shapes=[pltpu.VMEM((b, c), jnp.float32)],
        compiler_params=pltpu.CompilerParams(
            dimension_semantics=("arbitrary",),      # reduction over lane tiles
            vmem_limit_bytes=budget,
        ),
    )(x3, w_enc, b_enc, w_inputs, b_inputs, prompt_embed)


# ----------------------------------------------------------------------------
# Kernel 3 (hot path): out[b,c,:] = x[b,c,:] + sum_p attn[b,p] * prompts[p,c,:]
# grid = (num_lane_tiles, B); prompts tile resident across the batch axis.
# No sublane slicing, no concatenate — VPU broadcast-FMA on (C, tile) slabs.
# ----------------------------------------------------------------------------
def _mix_kernel(attn_ref, x_ref, pr_ref, o_ref, *, num_prompts):
    b = pl.program_id(1)
    # Hoist all SMEM scalar reads before any vector work.
    a = [attn_ref[b, pi] for pi in range(num_prompts)]
    acc = x_ref[0]                                    # (C, tile)
    for pi in range(num_prompts):                     # tiny P, fully unrolled
        acc = acc + a[pi] * pr_ref[pi]                # (C, tile) FMA
    o_ref[0] = acc.astype(o_ref.dtype)


def mix_prompts(x_bchw, attn, prompts_pchw, *, lane_tile=None):
    b, c, h, w = x_bchw.shape
    p = prompts_pchw.shape[0]
    hw = h * w
    budget = _vmem_budget_bytes()
    # f32 rows per lane-tile column, all double-buffered by the pipeline:
    #   x block (C) + out block (C) + prompts block (P*C).
    rows = c * (p + 2)
    tile = _resolve_lane_tile(hw, rows, budget, lane_tile)
    n_tiles = pl.cdiv(hw, tile)

    x3 = x_bchw.reshape(b, c, hw)          # contiguous NCHW reshape -> bitcast
    pr3 = prompts_pchw.reshape(p, c, hw)
    attn = attn.astype(jnp.float32)

    kernel = functools.partial(_mix_kernel, num_prompts=p)
    out = pl.pallas_call(
        kernel,
        out_shape=jax.ShapeDtypeStruct((b, c, hw), x_bchw.dtype),
        grid=(n_tiles, b),                 # batch inner -> prompt tile resident
        in_specs=[
            _SMEM,                                               # attn (B, P)
            pl.BlockSpec((1, c, tile), lambda j, bb: (bb, 0, j)),  # x tile
            pl.BlockSpec((p, c, tile), lambda j, bb: (0, 0, j)),   # prompts (no re-DMA over bb)
        ],
        out_specs=pl.BlockSpec((1, c, tile), lambda j, bb: (bb, 0, j)),
        input_output_aliases={1: 0},       # out reuses x's HBM buffer
        compiler_params=pltpu.CompilerParams(
            dimension_semantics=("parallel", "parallel"),
            vmem_limit_bytes=budget,
        ),
    )(attn, x3, pr3)
    return out.reshape(b, c, h, w)


# ----------------------------------------------------------------------------
# Module-level wrapper reproducing ProbabilisticPromptPool.forward.
# ----------------------------------------------------------------------------
def precompute_prompt_state(params, *, lane_tile=None):
    """Prompt-only work (depends on params, not x) — hoisted out of forward."""
    return {
        "prompt_embed": prompt_embeddings(
            params["prompts"], params["w_enc"], params["b_enc"],
            params["w_prompt"], params["b_prompt"], lane_tile=lane_tile),
    }


def probabilistic_prompt_pool_forward(x, params, *,
                                      use_softmax=False, use_tanh=False,
                                      uniform_mix=False, random_mix=False,
                                      random_key=None, prompt_state=None,
                                      lane_tile=None):
    assert not (uniform_mix and random_mix)
    prompts = params["prompts"]                  # (P, C, H, W)
    b = x.shape[0]
    p = prompts.shape[0]
    if p == 0:
        return x

    if uniform_mix:
        attn = jnp.full((b, p), 1.0 / p, dtype=jnp.float32)
    elif random_mix:
        r = jax.random.uniform(random_key, (b, p), dtype=jnp.float32)
        attn = r / jnp.sum(r, axis=1, keepdims=True)
    else:
        if prompt_state is None:
            prompt_state = precompute_prompt_state(params, lane_tile=lane_tile)
        attn = attention_weights(
            x, prompt_state["prompt_embed"],
            params["w_enc"], params["b_enc"],
            params["w_inputs"], params["b_inputs"],
            use_softmax=use_softmax, use_tanh=use_tanh, lane_tile=lane_tile)

    return mix_prompts(x, attn, prompts, lane_tile=lane_tile)


# ----------------------------------------------------------------------------
# Deterministic parameter construction (synthetic; no checkpoint load).
# ----------------------------------------------------------------------------
def make_params(key, *, num_prompts, channels, height, width,
                num_features, embed_dim):
    ks = jax.random.split(key, 7)
    scale = 0.05
    return {
        "prompts": scale * jax.random.normal(
            ks[0], (num_prompts, channels, height, width), jnp.float32),
        # feature-extractor substitute (stands in for timm resnet18)
        "w_enc": scale * jax.random.normal(ks[1], (channels, num_features),
                                           jnp.float32),
        "b_enc": scale * jax.random.normal(ks[2], (1, num_features),
                                           jnp.float32),
        "w_inputs": scale * jax.random.normal(ks[3], (num_features, embed_dim),
                                              jnp.float32),
        "b_inputs": scale * jax.random.normal(ks[4], (1, embed_dim),
                                              jnp.float32),
        "w_prompt": scale * jax.random.normal(ks[5], (num_features, embed_dim),
                                              jnp.float32),
        "b_prompt": scale * jax.random.normal(ks[6], (1, embed_dim),
                                              jnp.float32),
    }


def _reference_forward(x, params, *, use_softmax, use_tanh):
    """Pure-JAX reference mirroring the kernels (for a sanity check)."""
    prompts = params["prompts"]
    b = x.shape[0]
    p = prompts.shape[0]
    gap_x = jnp.mean(x.reshape(b, x.shape[1], -1), axis=-1)
    gap_p = jnp.mean(prompts.reshape(p, prompts.shape[1], -1), axis=-1)
    fx = gap_x @ params["w_enc"] + params["b_enc"]
    fp = gap_p @ params["w_enc"] + params["b_enc"]
    ie = fx @ params["w_inputs"] + params["b_inputs"]
    pe = fp @ params["w_prompt"] + params["b_prompt"]
    attn = ie @ pe.T
    if use_softmax:
        attn = jax.nn.softmax(attn, axis=1)
    if use_tanh:
        attn = jnp.tanh(attn)
    mix = jnp.einsum("bp,pchw->bchw", attn, prompts)
    return x + mix


if __name__ == "__main__":
    key = jax.random.PRNGKey(0)
    k_x, k_params, k_x2, k_params2 = jax.random.split(key, 4)

    P, F, D = 3, 32, 16                 # prompters, encoder features, embed_dim

    # ---- Test 1: nominal small shapes; budget-derived (full-extent) tiles. ----
    B, C, H, W = 2, 4, 32, 32
    x = jax.random.normal(k_x, (B, C, H, W), jnp.float32)
    params = make_params(k_params, num_prompts=P, channels=C, height=H,
                         width=W, num_features=F, embed_dim=D)
    prompt_state = precompute_prompt_state(params)   # hoisted, reused across calls
    out = probabilistic_prompt_pool_forward(
        x, params, use_softmax=False, use_tanh=False, prompt_state=prompt_state)
    out = jax.block_until_ready(out)
    assert out.shape == (B, C, H, W) and out.dtype == jnp.float32
    ref = _reference_forward(x, params, use_softmax=False, use_tanh=False)
    assert jnp.allclose(out, ref, rtol=1e-4, atol=1e-4)

    # ---- Test 2: odd spatial size (H*W=900, not a 128 multiple) + forced small
    #      lane tile to exercise the cdiv partial-last-block path and the
    #      in-kernel GAP masking, plus the softmax branch. ----
    B2, C2, H2, W2 = 2, 4, 30, 30
    x2 = jax.random.normal(k_x2, (B2, C2, H2, W2), jnp.float32)
    params2 = make_params(k_params2, num_prompts=P, channels=C2, height=H2,
                          width=W2, num_features=F, embed_dim=D)
    out2 = probabilistic_prompt_pool_forward(
        x2, params2, use_softmax=True, use_tanh=False, lane_tile=256)
    out2 = jax.block_until_ready(out2)
    ref2 = _reference_forward(x2, params2, use_softmax=True, use_tanh=False)
    assert jnp.allclose(out2, ref2, rtol=1e-4, atol=1e-4)

    print("KERNEL_OK")
</pallas_src>

<mosaic_0001>
module attributes {stable_mosaic.version = 11 : i64} {
  func.func @_prompt_embed_kernel(%arg0: i32, %arg1: memref<3x4x1024xf32, #tpu.memory_space<vmem>>, %arg2: memref<4x32xf32, #tpu.memory_space<vmem>>, %arg3: memref<1x32xf32, #tpu.memory_space<vmem>>, %arg4: memref<32x16xf32, #tpu.memory_space<vmem>>, %arg5: memref<1x16xf32, #tpu.memory_space<vmem>>, %arg6: memref<3x16xf32, #tpu.memory_space<vmem>>, %arg7: memref<3x4xf32, #tpu.memory_space<vmem>>) attributes {dimension_semantics = [#tpu.dimension_semantics<arbitrary>], iteration_bounds = array<i64: 1>, scalar_prefetch = 0 : i64, scratch_operands = 1 : i64, tpu.core_type = #tpu.core_type<tc>, window_params = [{transform_indices = @transform_0, window_bounds = array<i64: 3, 4, 1024>}, {pipeline_mode = #tpu.pipeline_mode<synchronous>, transform_indices = @transform_1, window_bounds = array<i64: 4, 32>}, {pipeline_mode = #tpu.pipeline_mode<synchronous>, transform_indices = @transform_2, window_bounds = array<i64: 1, 32>}, {pipeline_mode = #tpu.pipeline_mode<synchronous>, transform_indices = @transform_3, window_bounds = array<i64: 32, 16>}, {pipeline_mode = #tpu.pipeline_mode<synchronous>, transform_indices = @transform_4, window_bounds = array<i64: 1, 16>}, {pipeline_mode = #tpu.pipeline_mode<synchronous>, transform_indices = @transform_5, window_bounds = array<i64: 3, 16>}]} {
    %c0_i32 = arith.constant 0 : i32
    %0 = arith.cmpi eq, %arg0, %c0_i32 : i32
    %1 = arith.extui %0 : i1 to i32
    %c0_i32_0 = arith.constant 0 : i32
    %2 = arith.cmpi ne, %1, %c0_i32_0 : i32
    scf.if %2 {
      %cst_9 = arith.constant 0.000000e+00 : f32
      %11 = vector.broadcast %cst_9 : f32 to vector<3x4xf32>
      %c0_10 = arith.constant 0 : index
      %c0_11 = arith.constant 0 : index
      %12 = vector.load %arg7[%c0_10, %c0_11] : memref<3x4xf32, #tpu.memory_space<vmem>>, vector<3x4xf32>
      tpu.vector_store %arg7[%c0_10, %c0_11], %11 {strides = array<i32>} : memref<3x4xf32, #tpu.memory_space<vmem>>, vector<3x4xf32>,
    } else {
    }
    %c0 = arith.constant 0 : index
    %c0_1 = arith.constant 0 : index
    %c0_2 = arith.constant 0 : index
    %3 = vector.load %arg1[%c0, %c0_1, %c0_2] : memref<3x4x1024xf32, #tpu.memory_space<vmem>>, vector<3x4x1024xf32>
    %c0_3 = arith.constant 0 : index
    %c0_4 = arith.constant 0 : index
    %4 = vector.load %arg7[%c0_3, %c0_4] : memref<3x4xf32, #tpu.memory_space<vmem>>, vector<3x4xf32>
    %cst = arith.constant dense<0.000000e+00> : vector<3x4xf32>
    %5 = vector.multi_reduction <add>, %3, %cst [2] : vector<3x4x1024xf32> to vector<3x4xf32>
    %6 = arith.addf %4, %5 : vector<3x4xf32>
    %c0_5 = arith.constant 0 : index
    %c0_6 = arith.constant 0 : index
    %7 = vector.load %arg7[%c0_5, %c0_6] : memref<3x4xf32, #tpu.memory_space<vmem>>, vector<3x4xf32>
    tpu.vector_store %arg7[%c0_5, %c0_6], %6 {strides = array<i32>} : memref<3x4xf32, #tpu.memory_space<vmem>>, vector<3x4xf32>,
    %c0_i32_7 = arith.constant 0 : i32
    %8 = arith.cmpi eq, %arg0, %c0_i32_7 : i32
    %9 = arith.extui %8 : i1 to i32
    %c0_i32_8 = arith.constant 0 : i32
    %10 = arith.cmpi ne, %9, %c0_i32_8 : i32
    scf.if %10 {
      %c0_9 = arith.constant 0 : index
      %c0_10 = arith.constant 0 : index
      %11 = vector.load %arg7[%c0_9, %c0_10] : memref<3x4xf32, #tpu.memory_space<vmem>>, vector<3x4xf32>
      %cst_11 = arith.constant 9.765625E-4 : f32
      %12 = vector.broadcast %cst_11 : f32 to vector<3x4xf32>
      %13 = arith.mulf %11, %12 : vector<3x4xf32>
      %c0_12 = arith.constant 0 : index
      %c0_13 = arith.constant 0 : index
      %14 = vector.load %arg2[%c0_12, %c0_13] : memref<4x32xf32, #tpu.memory_space<vmem>>, vector<4x32xf32>
      %cst_14 = arith.constant dense<0.000000e+00> : vector<3x32xf32>
      %15 = tpu.matmul %13, %14, %cst_14 {dimension_numbers = #tpu.dot_dimension_numbers<[1], [0], [0], [1], [0, 0, 1, 1], [], []>} : vector<3x4xf32>, vector<4x32xf32>, vector<3x32xf32> -> vector<3x32xf32>
      %c0_15 = arith.constant 0 : index
      %c0_16 = arith.constant 0 : index
      %16 = vector.load %arg3[%c0_15, %c0_16] : memref<1x32xf32, #tpu.memory_space<vmem>>, vector<1x32xf32>
      %17 = vector.broadcast %16 : vector<1x32xf32> to vector<3x32xf32>
      %18 = arith.addf %15, %17 : vector<3x32xf32>
      %c0_17 = arith.constant 0 : index
      %c0_18 = arith.constant 0 : index
      %19 = vector.load %arg4[%c0_17, %c0_18] : memref<32x16xf32, #tpu.memory_space<vmem>>, vector<32x16xf32>
      %cst_19 = arith.constant dense<0.000000e+00> : vector<3x16xf32>
      %20 = tpu.matmul %18, %19, %cst_19 {dimension_numbers = #tpu.dot_dimension_numbers<[1], [0], [0], [1], [0, 0, 1, 1], [], []>} : vector<3x32xf32>, vector<32x16xf32>, vector<3x16xf32> -> vector<3x16xf32>
      %c0_20 = arith.constant 0 : index
      %c0_21 = arith.constant 0 : index
      %21 = vector.load %arg5[%c0_20, %c0_21] : memref<1x16xf32, #tpu.memory_space<vmem>>, vector<1x16xf32>
      %22 = vector.broadcast %21 : vector<1x16xf32> to vector<3x16xf32>
      %23 = arith.addf %20, %22 : vector<3x16xf32>
      %c0_22 = arith.constant 0 : index
      %c0_23 = arith.constant 0 : index
      %24 = vector.load %arg6[%c0_22, %c0_23] : memref<3x16xf32, #tpu.memory_space<vmem>>, vector<3x16xf32>
      tpu.vector_store %arg6[%c0_22, %c0_23], %23 {strides = array<i32>} : memref<3x16xf32, #tpu.memory_space<vmem>>, vector<3x16xf32>,
    } else {
    }
    return
  }
  func.func @transform_0(%arg0: i32) -> (i32, i32, i32) {
    %c0_i32 = arith.constant 0 : i32
    %c0_i32_0 = arith.constant 0 : i32
    %c0_i32_1 = arith.constant 0 : i32
    return %c0_i32, %c0_i32_0, %arg0 : i32, i32, i32
  }
  func.func @transform_1(%arg0: i32) -> (i32, i32) {
    %c0_i32 = arith.constant 0 : i32
    %c0_i32_0 = arith.constant 0 : i32
    %c0_i32_1 = arith.constant 0 : i32
    return %c0_i32, %c0_i32_0 : i32, i32
  }
  func.func @transform_2(%arg0: i32) -> (i32, i32) {
    %c0_i32 = arith.constant 0 : i32
    %c0_i32_0 = arith.constant 0 : i32
    %c0_i32_1 = arith.constant 0 : i32
    return %c0_i32, %c0_i32_0 : i32, i32
  }
  func.func @transform_3(%arg0: i32) -> (i32, i32) {
    %c0_i32 = arith.constant 0 : i32
    %c0_i32_0 = arith.constant 0 : i32
    %c0_i32_1 = arith.constant 0 : i32
    return %c0_i32, %c0_i32_0 : i32, i32
  }
  func.func @transform_4(%arg0: i32) -> (i32, i32) {
    %c0_i32 = arith.constant 0 : i32
    %c0_i32_0 = arith.constant 0 : i32
    %c0_i32_1 = arith.constant 0 : i32
    return %c0_i32, %c0_i32_0 : i32, i32
  }
  func.func @transform_5(%arg0: i32) -> (i32, i32) {
    %c0_i32 = arith.constant 0 : i32
    %c0_i32_0 = arith.constant 0 : i32
    %c0_i32_1 = arith.constant 0 : i32
    return %c0_i32, %c0_i32_0 : i32, i32
  }
}

</mosaic_0001>

<bundles_post_ra>
// kernel: tpu_custom_call.1
= control target key start
LH: loop header
LB: loop body
LE: loop exit
PB: predicated region body
PF: predicated region fallthrough
CT: control target
= control target key end

     0   :  { %10 = vsyncpa [#allocation4], 0  ;;  %s438_s0 = inlined_call_operand.hbm [shape: f32[3,4,1024], index: 0, kind: input, shape index: {}]   ;;  %s439_s1 = inlined_call_operand.vmem [shape: f32[4,32], index: 1, kind: input, shape index: {}]   ;;  %s440_s2 = inlined_call_operand.vmem [shape: f32[1,32], index: 2, kind: input, shape index: {}]   ;;  %s441_s3 = inlined_call_operand.vmem [shape: f32[32,16], index: 3, kind: input, shape index: {}]   ;;  %s442_s4 = inlined_call_operand.vmem [shape: f32[1,16], index: 4, kind: input, shape index: {}]   ;;  %s443_s5 = inlined_call_operand.hbm [shape: f32[3,16], index: 5, kind: output, shape index: {}]  }
   0x1   :  { %11 = vsyncpa [#allocation5], 0  ;;  %s16_s20 = sshll.u32 %s438_s0, 4  ;;  %s349_s21 = smov [#allocation3]   ;;  %s17_s20 = int_to_ptr.hbm [resolvable:$true] %s16_s20 }
   0x2   :  { %s18_s22 = sshll.u32 %s349_s21, 4  ;;  %s350_s23 = smov 512   ;;  %s19_s22 = int_to_ptr.vmem [resolvable:$true] %s18_s22 }
   0x3   :  { %s351_s24 = smov 32  }
   0x4   :  { %24 = dma.hbm_to_vmem [thread:$0]  %s17_s20, 1536, %s19_s22, [#allocation4], %s350_s23, %s350_s23, %s351_s24  }
   0x5   :  { %345 = dma.done.wait [#allocation4], 1536  }
   0x6   :  { %346 = vsyncadd [#allocation4], 4294965760  ;;  %v43_v0 = vld [vmem:[#allocation3] sm:$0xff]  ;;  %v44_v1 = vld [vmem:[#allocation3 + $0x8] sm:$0xff]  ;;  %vm131_vm0 = vcmask 1043456   ;;  %vm41_vm1 = vcmask 26624  }
   0x7   :  { %v45_v2 = vld [vmem:[#allocation3 + $0x10] sm:$0xff]  ;;  %v46_v3 = vld [vmem:[#allocation3 + $0x18] sm:$0xff]  ;;  %68 = vst [vmem:[#allocation1] ss:$2 sm:$0xff] %v43_v0  ;;  %v48_v4 = vld [vmem:[#allocation3 + $0x28] sm:$0xff]  ;;  %vm191_vm2 = vcmask 1041409  }
   0x8   :  { %70 = vst [vmem:[#allocation1 + $0x10] ss:$2 sm:$0xff] %v44_v1  ;;  %v49_v5 = vld [vmem:[#allocation3 + $0x30] sm:$0xff]  ;;  %v50_v8 = vld [vmem:[#allocation3 + $0x38] sm:$0xff]  ;;  %v47_v15 = vld [vmem:[#allocation3 + $0x20] sm:$0xff]  ;;  %vm193_vm3 = vcmask 1042434  }
   0x9   :  { %72 = vst [vmem:[#allocation1 + $0x20] ss:$2 sm:$0xff] %v45_v2  ;;  %v52_v27 = vld [vmem:[#allocation3 + $0x48] sm:$0xff]  ;;  %v53_v29 = vld [vmem:[#allocation3 + $0x50] sm:$0xff]  ;;  %v54_v32 = vld [vmem:[#allocation3 + $0x58] sm:$0xff]  ;;  %vm209_vm4 = vcmask 31744  }
   0xa   :  { %74 = vst [vmem:[#allocation1 + $0x30] ss:$2 sm:$0xff] %v46_v3  ;;  %v51_v41 = vld [vmem:[#allocation3 + $0x40] sm:$0xff]  ;;  %vm244_vm5 = vcmask 261120   ;;  %s353_s12 = smov [#allocation6]   ;;  %s277_s16 = sshll.u32 %s443_s5, 4  ;;  %s278_s16 = int_to_ptr.hbm [resolvable:$true] %s277_s16 }
   0xb   :  { %s275_s13 = sshll.u32 %s353_s12, 4  ;;  %vm268_vm6 = vcmask 124928   ;;  %s276_s13 = int_to_ptr.vmem [resolvable:$true] %s275_s13 }
   0xe   :  { %v75_v6 = vld.sshfl [vmem:[#allocation1] sm:$0xff pattern:$0x75316420]  ;;  %v76_v7 = vld.sshfl [vmem:[#allocation1 + $0x8] sm:$0xff pattern:$0x75316420] }
   0xf   :  { %v77_v9 = vld.sshfl [vmem:[#allocation1 + $0x10] sm:$0xff pattern:$0x75316420]  ;;  %v78_v10 = vld.sshfl [vmem:[#allocation1 + $0x18] sm:$0xff pattern:$0x75316420] }
  0x10   :  { %v79_v11 = vld.sshfl [vmem:[#allocation1 + $0x20] sm:$0xff pattern:$0x75316420]  ;;  %v80_v12 = vld.sshfl [vmem:[#allocation1 + $0x28] sm:$0xff pattern:$0x75316420] }
  0x11   :  { %v81_v13 = vld.sshfl [vmem:[#allocation1 + $0x30] sm:$0xff pattern:$0x75316420]  ;;  %v82_v14 = vld.sshfl [vmem:[#allocation1 + $0x38] sm:$0xff pattern:$0x75316420] }
  0x12   :  { %84 = vst [vmem:[#allocation1 + $0x10] ss:$2 sm:$0xff] %v48_v4  ;;  %v132_v16 = vsel %vm131_vm0, %v75_v6, 0.0  ;;  %v133_v17 = vsel %vm131_vm0, %v76_v7, 0.0  ;;  %v135_v18 = vsel %vm131_vm0, %v77_v9, 0.0  ;;  %v137_v20 = vsel %vm131_vm0, %v78_v10, 0.0 }
  0x13   :  { %85 = vst [vmem:[#allocation1 + $0x20] ss:$2 sm:$0xff] %v49_v5  ;;  %v134_v19 = vadd.f32 %v133_v17, %v132_v16  ;;  %v139_v22 = vsel %vm131_vm0, %v79_v11, 0.0  ;;  %v141_v24 = vsel %vm131_vm0, %v80_v12, 0.0  ;;  %v143_v25 = vsel %vm131_vm0, %v81_v13, 0.0 }
  0x14   :  { %86 = vst [vmem:[#allocation1 + $0x30] ss:$2 sm:$0xff] %v50_v8  ;;  %v145_v26 = vsel %vm131_vm0, %v82_v14, 0.0  ;;  %v352_v17 = vmov 0.0  }
  0x15   :  { %v136_v21 = vadd.f32 %v135_v18, %v134_v19  ;;  %83 = vst [vmem:[#allocation1] ss:$2 sm:$0xff] %v47_v15  ;;  %v204_v18 = vld [vmem:[%s439_s1] sm:$0xf]  ;;  %v239_v19 = vld [vmem:[%s441_s3 + $0x18] sm:$0xff] }
  0x16   :  { %42 = vst.msk [vmem:[#allocation2] sm:$0x7] %vm41_vm1, %v352_v17  ;;  %287 = vmatpush.msk.msra.mxu0 %vm131_vm0, %v204_v18  ;;  %260 = vmatpush.msra.mxu1 %v239_v19 }
  0x17   :  { %v138_v23 = vadd.f32 %v137_v20, %v136_v21  ;;  %v238_v20 = vld [vmem:[%s441_s3 + $0x10] sm:$0xff] }
  0x18   :  { %261 = vmatpush.msra.mxu1 %v238_v20 }
  0x19   :  { %v140_v28 = vadd.f32 %v139_v22, %v138_v23  ;;  %v89_v30 = vld.sshfl [vmem:[#allocation1 + $0x10] sm:$0xff pattern:$0x75316420]  ;;  %v90_v31 = vld.sshfl [vmem:[#allocation1 + $0x18] sm:$0xff pattern:$0x75316420]  ;;  %v186_v22 = vlaneseq }
  0x1a   :  { %v91_v33 = vld.sshfl [vmem:[#allocation1 + $0x20] sm:$0xff pattern:$0x75316420]  ;;  %v92_v34 = vld.sshfl [vmem:[#allocation1 + $0x28] sm:$0xff pattern:$0x75316420] }
  0x1b   :  { %v142_v35 = vadd.f32 %v141_v24, %v140_v28  ;;  %v93_v36 = vld.sshfl [vmem:[#allocation1 + $0x30] sm:$0xff pattern:$0x75316420]  ;;  %v94_v37 = vld.sshfl [vmem:[#allocation1 + $0x38] sm:$0xff pattern:$0x75316420] }
  0x1c   :  { %v87_v38 = vld.sshfl [vmem:[#allocation1] sm:$0xff pattern:$0x75316420]  ;;  %v88_v39 = vld.sshfl [vmem:[#allocation1 + $0x8] sm:$0xff pattern:$0x75316420] }
  0x1d   :  { %v144_v40 = vadd.f32 %v143_v25, %v142_v35  ;;  %96 = vst [vmem:[#allocation1 + $0x10] ss:$2 sm:$0xff] %v52_v27  ;;  %v149_v42 = vsel %vm131_vm0, %v87_v38, 0.0  ;;  %v150_v43 = vsel %vm131_vm0, %v88_v39, 0.0  ;;  %v152_v44 = vsel %vm131_vm0, %v89_v30, 0.0  ;;  %v237_v35 = vld [vmem:[%s441_s3 + $0x8] sm:$0xff] }
  0x1e   :  { %97 = vst [vmem:[#allocation1 + $0x20] ss:$2 sm:$0xff] %v53_v29  ;;  %v151_v45 = vadd.f32 %v150_v43, %v149_v42  ;;  %v154_v47 = vsel %vm131_vm0, %v90_v31, 0.0  ;;  %v156_v49 = vsel %vm131_vm0, %v91_v33, 0.0  ;;  %v158_v51 = vsel %vm131_vm0, %v92_v34, 0.0  ;;  %262 = vmatpush.msra.mxu1 %v237_v35 }
  0x1f   :  { %v146_v46 = vadd.f32 %v145_v26, %v144_v40  ;;  %98 = vst [vmem:[#allocation1 + $0x30] ss:$2 sm:$0xff] %v54_v32  ;;  %v160_v53 = vsel %vm131_vm0, %v93_v36, 0.0  ;;  %v162_v56 = vsel %vm131_vm0, %v94_v37, 0.0  ;;  %v187_v23 = vand.u32 127, %v186_v22  ;;  %v236_v36 = vld [vmem:[%s441_s3] sm:$0xff] }
  0x20   :  { %v153_v48 = vadd.f32 %v152_v44, %v151_v45  ;;  %95 = vst [vmem:[#allocation1] ss:$2 sm:$0xff] %v51_v41  ;;  %v55_v28 = vld [vmem:[#allocation2] sm:$0x7]  ;;  %263 = vmatpush.msra.mxu1 %v236_v36  ;;  %v295_v37 = vld [vmem:[%s440_s2] ss:$0 sm:$0xff] }
  0x21   :  { %147 = vadd.xlane.f32.xlu0 %v146_v46  ;;  %v296_v40 = vld [vmem:[%s442_s4] ss:$0 sm:$0xff] }
  0x22   :  { %v155_v50 = vadd.f32 %v154_v47, %v153_v48 }
  0x24   :  { %v157_v52 = vadd.f32 %v156_v49, %v155_v50  ;;  %v101_v54 = vld.sshfl [vmem:[#allocation1 + $0x10] sm:$0xff pattern:$0x75316420]  ;;  %v102_v57 = vld.sshfl [vmem:[#allocation1 + $0x18] sm:$0xff pattern:$0x75316420] }
  0x25   :  { %v169_v63 = vsel %vm131_vm0, %v101_v54, 0.0  ;;  %v103_v0 = vld.sshfl [vmem:[#allocation1 + $0x20] sm:$0xff pattern:$0x75316420]  ;;  %v171_v3 = vsel %vm131_vm0, %v102_v57, 0.0 }
  0x26   :  { %v159_v55 = vadd.f32 %v158_v51, %v157_v52  ;;  %v104_v4 = vld.sshfl [vmem:[#allocation1 + $0x28] sm:$0xff pattern:$0x75316420]  ;;  %v173_v6 = vsel %vm131_vm0, %v103_v0, 0.0 }
  0x27   :  { %v99_v58 = vld.sshfl [vmem:[#allocation1] sm:$0xff pattern:$0x75316420]  ;;  %v100_v59 = vld.sshfl [vmem:[#allocation1 + $0x8] sm:$0xff pattern:$0x75316420] }
  0x28   :  { %v161_v60 = vadd.f32 %v160_v53, %v159_v55  ;;  %v166_v61 = vsel %vm131_vm0, %v99_v58, 0.0  ;;  %v167_v62 = vsel %vm131_vm0, %v100_v59, 0.0  ;;  %v105_v7 = vld.sshfl [vmem:[#allocation1 + $0x30] sm:$0xff pattern:$0x75316420]  ;;  %v175_v9 = vsel %vm131_vm0, %v104_v4, 0.0 }
  0x29   :  { %v168_v1 = vadd.f32 %v167_v62, %v166_v61  ;;  %v106_v10 = vld.sshfl [vmem:[#allocation1 + $0x38] sm:$0xff pattern:$0x75316420]  ;;  %v177_v12 = vsel %vm131_vm0, %v105_v7, 0.0 }
  0x2a   :  { %v163_v2 = vadd.f32 %v162_v56, %v161_v60  ;;  %v179_v14 = vsel %vm131_vm0, %v106_v10, 0.0 }
  0x2b   :  { %v170_v5 = vadd.f32 %v169_v63, %v168_v1 }
  0x2c   :  { %164 = vadd.xlane.f32.xlu0 %v163_v2 }
  0x2d   :  { %v172_v8 = vadd.f32 %v171_v3, %v170_v5 }
  0x2f   :  { %v174_v11 = vadd.f32 %v173_v6, %v172_v8 }
  0x31   :  { %v176_v13 = vadd.f32 %v175_v9, %v174_v11 }
  0x33   :  { %v178_v15 = vadd.f32 %v177_v12, %v176_v13 }
  0x35   :  { %v180_v16 = vadd.f32 %v179_v14, %v178_v15 }
  0x37   :  { %181 = vadd.xlane.f32.xlu1 %v180_v16 }
  0x94   :  { %v148_v21 = vpop.xlane.xlu0 %147 }
  0x95   :  { %v188_v25 = vperm.slane %v148_v21, %v187_v23 }
  0x9f   :  { %v165_v24 = vpop.xlane.xlu0 %164 }
  0xa0   :  { %v189_v26 = vperm.slane %v165_v24, %v187_v23 }
  0xa2   :  { %v192_v30 = vsel %vm191_vm2, %v189_v26, %v188_v25 }
  0xaa   :  { %v182_v27 = vpop.xlane.xlu1 %181 }
  0xab   :  { %v190_v29 = vperm.slane %v182_v27, %v187_v23 }
  0xad   :  { %v194_v31 = vsel %vm193_vm3, %v190_v29, %v192_v30 }
  0xae   :  { %v196_v32 = vadd.f32 %v194_v31, %v55_v28 }
  0xb0   :  { %198 = vst.msk [vmem:[#allocation2] sm:$0x7] %vm41_vm1, %v196_v32 }
  0xb7   :  { %v202_v33 = vld [vmem:[#allocation2] sm:$0x7] }
  0xb8   :  { %v203_v34 = vmul.f32 0.0009765625, %v202_v33 }
  0xba   :  { %288 = vmatmul.msk.f32.vlgmr.msra.gmra.mxu0 %vm209_vm4, %v203_v34 }
 0x137   :  { %v233_v38 = vpop.f32.mrf.mxu0 }
 0x138   :  { %v234_v39 = vadd.f32 %v295_v37, %v233_v38 }
 0x13a   :  { %289 = vmatmul.msk.f32.vlgmr.msra.gmra.mxu1 %vm244_vm5, %v234_v39 }
 0x1b7   :  { %v265_v41 = vpop.f32.mrf.mxu1 }
 0x1b8   :  { %v266_v42 = vadd.f32 %v296_v40, %v265_v41 }
 0x1ba   :  { %269 = vst.msk [vmem:[#allocation6] sm:$0x7] %vm268_vm6, %v266_v42 }
 0x1bb   :  { %280 = dma.vmem_to_hbm [thread:$0]  %s276_s13, 64, %s278_s16, [#allocation5]  }
 0x1bc   :  { %347 = dma.done.wait [#allocation5], 64  }
 0x1bd   :  { %348 = vsyncadd [#allocation5], 4294967232 }
 0x1be   :  { %285 = vsyncpa [#allocation4], 1 }
 0x1bf   :  { %286 = vsyncpa [#allocation5], 1 }

</bundles_post_ra>
